<compile_context>
chip_gen: v5e
topology: v5e:2x2
jax: 0.10.0
libtpu: 0.0.40
codegen_flags: <defaults>
</compile_context>

<pallas_src>
import jax
import jax.numpy as jnp
from jax import lax
from jax.experimental import pallas as pl
from jax.experimental.pallas import tpu as pltpu


def _round_up(v, m):
    return ((v + m - 1) // m) * m


# ----------------------------------------------------------------------------
# Fused forward kernel
#   logits = 100 * (normalize(x @ W_img, dim=1) @ txt_dl)        txt_dl = txt_n.T
# Grid = (B tiles [parallel], K tiles [arbitrary/reduction]). The [tb, D]
# image-feature accumulator lives in f32 VMEM scratch; normalization + the
# logits matmul + the lane-dense store happen on the last K step.
# ----------------------------------------------------------------------------
def _fused_clip_kernel(x_ref, w_img_ref, txt_ref, o_ref, acc_ref):
    k = pl.program_id(1)

    @pl.when(k == 0)
    def _():
        acc_ref[...] = jnp.zeros_like(acc_ref)

    # bf16 operands (cast in the wrapper / baked at init) feed the MXU;
    # accumulation stays f32.
    acc_ref[...] += jnp.dot(
        x_ref[...], w_img_ref[...], preferred_element_type=jnp.float32)

    @pl.when(k == pl.num_programs(1) - 1)
    def _():
        img = acc_ref[...]                                           # [tb, D] f32
        # rsqrt -> EUP slot. Zero (padded) rows stay exactly zero.
        inv = lax.rsqrt(jnp.sum(img * img, axis=1, keepdims=True) + 1e-12)
        img_n = (img * inv).astype(jnp.bfloat16)                     # [tb, D] bf16
        # Pre-transposed, lane-padded text weights [D, Lpad] -> standard MXU
        # shape, no epilogue transpose, lane-dense output store.
        o_ref[...] = 100.0 * jnp.dot(
            img_n, txt_ref[...], preferred_element_type=jnp.float32)


def _pick_k_tile(k):
    """Generation-aware K tile + padded K. Bigger tiles on big-VMEM chips."""
    vmem_bytes = 64 << 20
    try:
        info = pltpu.get_tpu_info()
        vmem_bytes = int(getattr(info, "vmem_capacity_bytes", vmem_bytes))
    except Exception:
        pass
    tk_target = 2048 if vmem_bytes >= (96 << 20) else 1024
    if k <= tk_target:
        tk = _round_up(k, 128)       # single K step: reduction fits in VMEM,
        kp = tk                      # pipeline would be pure overhead.
    else:
        tk = tk_target
        kp = _round_up(k, tk)        # zero-pad K instead of tk=K fallback.
    return tk, kp


def pallas_text_guided_clip_logits(x_pad, w_img_pad, txt_dl, *, tb, tk):
    """x_pad [Bp, Kp] bf16, w_img_pad [Kp, D] bf16, txt_dl [D, Lp] bf16 -> [Bp, Lp] f32."""
    bp, kp = x_pad.shape
    kp2, d = w_img_pad.shape
    d2, lp = txt_dl.shape
    assert kp == kp2 and d == d2 and bp % tb == 0 and kp % tk == 0

    # Explicit scoped-VMEM budget: double-buffered bf16 input tiles + f32 acc
    # + resident text weights + double-buffered f32 output tile, with margin.
    vmem_need = (2 * (tb * tk + tk * d) * 2
                 + tb * d * 4
                 + d * lp * 2 * 2
                 + tb * lp * 4 * 2)
    vmem_limit = int(min(100 << 20, max(32 << 20, 2 * vmem_need)))

    return pl.pallas_call(
        _fused_clip_kernel,
        out_shape=jax.ShapeDtypeStruct((bp, lp), jnp.float32),
        grid_spec=pltpu.PrefetchScalarGridSpec(
            num_scalar_prefetch=0,
            grid=(bp // tb, kp // tk),
            in_specs=[
                pl.BlockSpec((tb, tk), lambda i, kk: (i, kk)),   # x tiles
                pl.BlockSpec((tk, d), lambda i, kk: (kk, 0)),    # w_img K tiles
                pl.BlockSpec((d, lp), lambda i, kk: (0, 0)),     # baked text weights
            ],
            out_specs=pl.BlockSpec((tb, lp), lambda i, kk: (i, 0)),
            scratch_shapes=[pltpu.VMEM((tb, d), jnp.float32)],
        ),
        compiler_params=pltpu.CompilerParams(
            dimension_semantics=("parallel", "arbitrary"),
            vmem_limit_bytes=vmem_limit,
        ),
    )(x_pad, w_img_pad, txt_dl)


# ----------------------------------------------------------------------------
# One-time text-side kernel (runs at model init, NOT on the hot path):
#   txt_n = normalize(pooled @ w_txt, dim=1)
# ----------------------------------------------------------------------------
def _text_encode_kernel(pooled_ref, w_txt_ref, o_ref):
    txt = jnp.dot(
        pooled_ref[...].astype(jnp.bfloat16),
        w_txt_ref[...],                      # stored bf16
        preferred_element_type=jnp.float32,
    )
    inv = lax.rsqrt(jnp.sum(txt * txt, axis=1, keepdims=True) + 1e-12)
    o_ref[...] = txt * inv


def pallas_text_encode(pooled, w_txt):
    l, t = pooled.shape
    t2, d = w_txt.shape
    assert t == t2
    return pl.pallas_call(
        _text_encode_kernel,
        out_shape=jax.ShapeDtypeStruct((l, d), jnp.float32),
        in_specs=[
            pl.BlockSpec((l, t), lambda: (0, 0)),
            pl.BlockSpec((t, d), lambda: (0, 0)),
        ],
        out_specs=pl.BlockSpec((l, d), lambda: (0, 0)),
    )(pooled, w_txt)


# ----------------------------------------------------------------------------
# TextGuidedClip forward (synthetic CLIP encoders, fused Pallas hot path)
# ----------------------------------------------------------------------------
class TextGuidedClipPallas:
    # TODO(synk): the real CLIP visual/text transformer encoders and the HF/open-clip
    # tokenizer are stood in by linear projections + a token-embedding mean-pool; the
    # post-encoder math (L2-normalize, 100x cosine logits) matches the module exactly.
    def __init__(self, key, *, channels, height, width, num_labels, seq_len,
                 vocab_size, token_dim, embed_dim):
        k_img, k_emb, k_txt, k_tok = jax.random.split(key, 4)
        self.embed_dim = embed_dim
        self.num_labels = num_labels
        k_feat = channels * height * width

        # K tiling / padding decided once, at init (generation aware).
        self.tk, self.kp = _pick_k_tile(k_feat)
        self.k_feat = k_feat

        # bf16 weights feed the MXU; accumulation / normalization stay f32.
        w_img = 0.02 * jax.random.normal(
            k_img, (k_feat, embed_dim), jnp.float32)
        w_img_pad = jnp.zeros((self.kp, embed_dim), jnp.float32)
        w_img_pad = w_img_pad.at[:k_feat, :].set(w_img)
        self.w_img = w_img_pad.astype(jnp.bfloat16)                 # [Kp, D]

        self.token_emb = 0.02 * jax.random.normal(
            k_emb, (vocab_size, token_dim), jnp.float32)
        self.w_txt = (0.02 * jax.random.normal(
            k_txt, (token_dim, embed_dim), jnp.float32)).astype(jnp.bfloat16)
        # "Tokenized labels" (what self.tokenizer(self.labels) would produce).
        self.text_tokens = jax.random.randint(
            k_tok, (num_labels, seq_len), 0, vocab_size, jnp.int32)

        # Labels / tokens are static -> hoist the whole text branch out of
        # forward (semantically identical to re-encoding them every call).
        emb = jnp.take(self.token_emb, self.text_tokens, axis=0)    # glue: gather
        pooled = jnp.mean(emb, axis=1)                              # [L, token_dim]
        txt_n = pallas_text_encode(pooled, self.w_txt)              # [L, D], unit-norm f32

        # Bake pre-transposed, lane-padded logit weights [D, Lpad] (bf16) so the
        # epilogue is a plain MXU dot with a lane-dense output store.
        self.lp = _round_up(num_labels, 128)
        txt_dl = jnp.zeros((embed_dim, self.lp), jnp.float32)
        txt_dl = txt_dl.at[:, :num_labels].set(txt_n.T)
        self.txt_dl = txt_dl.astype(jnp.bfloat16)

    def __call__(self, x_nchw):
        b = x_nchw.shape[0]
        # Glue: flatten NCHW, cast to bf16 once (halves x streaming bytes).
        x_flat = x_nchw.reshape(b, -1).astype(jnp.bfloat16)         # [B, K]
        tb = 256 if b >= 256 else _round_up(b, 8)
        bp = _round_up(b, tb)
        x_pad = jnp.zeros((bp, self.kp), jnp.bfloat16)
        x_pad = x_pad.at[:b, :self.k_feat].set(x_flat)
        logits = pallas_text_guided_clip_logits(
            x_pad, self.w_img, self.txt_dl, tb=tb, tk=self.tk)
        return logits[:b, :self.num_labels]


# ----------------------------------------------------------------------------
# Reference (pure JAX) — same bf16 weights / bf16 MXU feeds, f32 normalization,
# 100x applied to the f32 logits like the original module.
# ----------------------------------------------------------------------------
def reference_forward(model, x_nchw):
    b = x_nchw.shape[0]
    x_flat = x_nchw.reshape(b, -1)
    w_img = model.w_img[:model.k_feat, :]          # unpadded weights
    img = jnp.dot(x_flat.astype(jnp.bfloat16), w_img,
                  preferred_element_type=jnp.float32)
    emb = jnp.take(model.token_emb, model.text_tokens, axis=0)
    pooled = jnp.mean(emb, axis=1)
    txt = jnp.dot(pooled.astype(jnp.bfloat16), model.w_txt,
                  preferred_element_type=jnp.float32)
    img_n = img * lax.rsqrt(jnp.sum(img * img, axis=1, keepdims=True) + 1e-12)
    txt_n = txt * lax.rsqrt(jnp.sum(txt * txt, axis=1, keepdims=True) + 1e-12)
    return 100.0 * jnp.dot(img_n.astype(jnp.bfloat16),
                           txt_n.astype(jnp.bfloat16).T,
                           preferred_element_type=jnp.float32)


if __name__ == "__main__":
    key = jax.random.PRNGKey(0)
    k_model, k_x = jax.random.split(key)

    B, C, H, W = 2, 4, 16, 16      # image input, NCHW
    L, T = 8, 8                    # num labels, tokens per label
    VOCAB, TOK_D, EMBED = 32, 64, 128

    model = TextGuidedClipPallas(
        k_model, channels=C, height=H, width=W, num_labels=L, seq_len=T,
        vocab_size=VOCAB, token_dim=TOK_D, embed_dim=EMBED)

    x = jax.random.normal(k_x, (B, C, H, W), jnp.float32)

    logits = jax.block_until_ready(model(x))
    ref = reference_forward(model, x)

    assert logits.shape == (B, L), logits.shape
    max_err = float(jnp.max(jnp.abs(logits - ref)))
    assert jnp.allclose(logits, ref, atol=2e-2, rtol=2e-2), (
        f"max abs err {max_err}")

    print("KERNEL_OK")
</pallas_src>

<mosaic_0001>
module attributes {stable_mosaic.version = 11 : i64} {
  func.func @_text_encode_kernel(%arg0: memref<8x64xf32, #tpu.memory_space<vmem>>, %arg1: memref<64x128xbf16, #tpu.memory_space<vmem>>, %arg2: memref<8x128xf32, #tpu.memory_space<vmem>>) attributes {dimension_semantics = [], scalar_prefetch = 0 : i64, scratch_operands = 0 : i64, tpu.core_type = #tpu.core_type<tc>} {
    %c0 = arith.constant 0 : index
    %c0_0 = arith.constant 0 : index
    %0 = vector.load %arg0[%c0, %c0_0] : memref<8x64xf32, #tpu.memory_space<vmem>>, vector<8x64xf32>
    %1 = arith.truncf %0 : vector<8x64xf32> to vector<8x64xbf16>
    %c0_1 = arith.constant 0 : index
    %c0_2 = arith.constant 0 : index
    %2 = vector.load %arg1[%c0_1, %c0_2] : memref<64x128xbf16, #tpu.memory_space<vmem>>, vector<64x128xbf16>
    %cst = arith.constant dense<0.000000e+00> : vector<8x128xf32>
    %3 = tpu.matmul %1, %2, %cst {dimension_numbers = #tpu.dot_dimension_numbers<[1], [0], [0], [1], [0, 0, 1, 1], [], []>} : vector<8x64xbf16>, vector<64x128xbf16>, vector<8x128xf32> -> vector<8x128xf32>
    %4 = arith.mulf %3, %3 : vector<8x128xf32>
    %cst_3 = arith.constant dense<0.000000e+00> : vector<8xf32>
    %5 = vector.multi_reduction <add>, %4, %cst_3 [1] : vector<8x128xf32> to vector<8xf32>
    %6 = vector.shape_cast %5 : vector<8xf32> to vector<8x1xf32>
    %cst_4 = arith.constant 9.99999996E-13 : f32
    %7 = vector.broadcast %cst_4 : f32 to vector<8x1xf32>
    %8 = arith.addf %6, %7 : vector<8x1xf32>
    %9 = math.rsqrt %8 : vector<8x1xf32>
    %10 = vector.broadcast %9 : vector<8x1xf32> to vector<8x128xf32>
    %11 = arith.mulf %3, %10 : vector<8x128xf32>
    %c0_5 = arith.constant 0 : index
    %c0_6 = arith.constant 0 : index
    %12 = vector.load %arg2[%c0_5, %c0_6] : memref<8x128xf32, #tpu.memory_space<vmem>>, vector<8x128xf32>
    tpu.vector_store %arg2[%c0_5, %c0_6], %11 {strides = array<i32>} : memref<8x128xf32, #tpu.memory_space<vmem>>, vector<8x128xf32>,
    return
  }
}

</mosaic_0001>

<bundles_post_ra>
// kernel: tpu_custom_call.1
= control target key start
LH: loop header
LB: loop body
LE: loop exit
PB: predicated region body
PF: predicated region fallthrough
CT: control target
= control target key end

     0   :  { %7 = vsyncpa [#allocation3], 0  ;;  %s263_s0 = inlined_call_operand.hbm [shape: f32[8,64], index: 0, kind: input, shape index: {}]   ;;  %s264_s1 = inlined_call_operand.hbm [shape: bf16[64,128], index: 1, kind: input, shape index: {}]   ;;  %s265_s2 = inlined_call_operand.hbm [shape: f32[8,128], index: 2, kind: output, shape index: {}]  }
   0x1   :  { %8 = vsyncpa [#allocation6], 0 }
   0x2   :  { %9 = vsyncpa [#allocation4], 0  ;;  %s15_s11 = sshll.u32 %s263_s0, 4  ;;  %s234_s12 = smov [#allocation2]   ;;  %s16_s11 = int_to_ptr.hbm [resolvable:$true] %s15_s11 }
   0x3   :  { %s17_s13 = sshll.u32 %s234_s12, 4  ;;  %s25_s16 = sshll.u32 %s264_s1, 4  ;;  %s18_s13 = int_to_ptr.vmem [resolvable:$true] %s17_s13  ;;  %s26_s16 = int_to_ptr.hbm [resolvable:$true] %s25_s16 }
   0x4   :  { %20 = dma.hbm_to_vmem [thread:$0]  %s16_s11, 128, %s18_s13, [#allocation3]  }
   0x5   :  { %s235_s17 = smov [#allocation5]   ;;  %s236_s19 = smov 64  }
   0x6   :  { %s27_s18 = sshll.u32 %s235_s17, 4  ;;  %s237_s20 = smov 4   ;;  %s28_s18 = int_to_ptr.vmem [resolvable:$true] %s27_s18 }
   0x7   :  { %33 = dma.hbm_to_vmem [thread:$0]  %s26_s16, 512, %s28_s18, [#allocation6], %s236_s19, %s236_s19, %s237_s20  }
   0x8   :  { %228 = dma.done.wait [#allocation3], 128  }
   0x9   :  { %229 = vsyncadd [#allocation3], 4294967168 }
   0xa   :  { %230 = dma.done.wait [#allocation6], 512  }
   0xb   :  { %231 = vsyncadd [#allocation6], 4294966784  ;;  %v148_v0 = vld [vmem:[#allocation5 + $0x18] sm:$0xff]  ;;  %v147_v1 = vld [vmem:[#allocation5 + $0x10] sm:$0xff]  ;;  %vm77_vm0 = vcmask 523264   ;;  %s238_s0 = smov [#allocation7]  }
   0xc   :  { %85 = vmatpush.bf16.msra.mxu0 %v148_v0  ;;  %v146_v2 = vld [vmem:[#allocation5 + $0x8] sm:$0xff]  ;;  %v145_v3 = vld [vmem:[#allocation5] sm:$0xff]  ;;  %v43_v4 = vld [vmem:[#allocation2] sm:$0xff]  ;;  %s115_s1 = sshll.u32 %s238_s0, 4  ;;  %s117_s23 = sshll.u32 %s265_s2, 4  ;;  %s116_s1 = int_to_ptr.vmem [resolvable:$true] %s115_s1  ;;  %s118_s23 = int_to_ptr.hbm [resolvable:$true] %s117_s23 }
   0xd   :  { %v44_v5 = vpack.c.bf16 %v43_v4, %v43_v4 }
  0x10   :  { %86 = vmatpush.bf16.msra.mxu0 %v147_v1 }
  0x14   :  { %87 = vmatpush.bf16.msra.mxu0 %v146_v2 }
  0x18   :  { %88 = vmatpush.bf16.msra.mxu0 %v145_v3 }
  0x1b   :  { %144 = vmatmul.msk.bf16.vlgmr.msra.gmra.mxu0 %vm77_vm0, %v44_v5 }
  0x98   :  { %v90_v6 = vpop.f32.mrf.mxu0 }
  0x99   :  { %v94_v7 = vmul.f32 %v90_v6, %v90_v6 }
  0x9b   :  { %95 = vadd.xlane.f32.xlu0 %v94_v7 }
  0xa0   :  { %v92_v8 = vpop.f32.mrf.mxu0 }
 0x10e   :  { %v96_v9 = vpop.xlane.xlu0 %95 }
 0x10f   :  { %v97_v10 = vadd.f32 1e-12, %v96_v9 }
 0x111   :  { %154 = vrsqrt.f32 %v97_v10  ;;  %vm104_vm2 = vweird.f32 %v97_v10 }
 0x117   :  { %v155_v11 = vpop.eup %154 }
 0x118   :  { %v99_v12 = vmul.f32 %v155_v11, %v97_v10  ;;  %vm105_vm1 = vweird.f32 %v155_v11 }
 0x119   :  { %vm106_vm3 = vmor %vm104_vm2, %vm105_vm1 }
 0x11a   :  { %v100_v13 = vmul.f32 %v155_v11, %v99_v12 }
 0x11c   :  { %v101_v14 = vmul.f32 0.5, %v100_v13 }
 0x11e   :  { %v102_v15 = vsub.f32 1.5, %v101_v14 }
 0x120   :  { %v103_v16 = vmul.f32 %v155_v11, %v102_v15 }
 0x122   :  { %v107_v17 = vsel %vm106_vm3, %v155_v11, %v103_v16 }
 0x123   :  { %v108_v18 = vmul.f32 %v107_v17, %v90_v6 }
 0x125   :  { %109 = vst [vmem:[#allocation7] sm:$0xff] %v108_v18 }
 0x126   :  { %120 = dma.vmem_to_hbm [thread:$0]  %s116_s1, 128, %s118_s23, [#allocation4]  }
 0x127   :  { %232 = dma.done.wait [#allocation4], 128  }
 0x128   :  { %233 = vsyncadd [#allocation4], 4294967168 }
 0x129   :  { %125 = vsyncpa [#allocation3], 1 }
 0x12a   :  { %126 = vsyncpa [#allocation6], 1 }
 0x12b   :  { %127 = vsyncpa [#allocation4], 1 }

</bundles_post_ra>
